<compile_context>
chip_gen: v7x
topology: tpu7x:2x2x1
jax: 0.10.0
libtpu: 0.0.40
codegen_flags: <defaults>
</compile_context>

<pallas_src>
import functools

import jax
import jax.numpy as jnp
from jax.experimental import pallas as pl
from jax.experimental.pallas import tpu as pltpu

_LANE = 128      # vreg lane width
_SUBLANE = 16    # bf16-safe sublane granularity for batch tiles


def _round_up(x, m):
    return (x + m - 1) // m * m


def _vmem_budget_bytes():
    """~55% of this generation's physical VMEM (v5e/v6e 128 MiB, v7x 64 MiB/TC)."""
    try:
        return int(pltpu.get_tpu_info().vmem_capacity_bytes * 0.55)
    except Exception:
        return 32 << 20  # conservative fallback, safe on every generation


def _mlp_kernel(num_layers, compute_dtype, x_ref, *refs):
    # refs = (w0_ref, b0_ref, w1_ref, b1_ref, ..., out_ref)
    out_ref = refs[-1]
    param_refs = refs[:-1]

    h = x_ref[...].astype(compute_dtype)                # [tb, d_in] bf16 MXU input
    for layer in range(num_layers):
        w = param_refs[2 * layer][...]                  # [din_eff, dout_eff] bf16
        b = param_refs[2 * layer + 1][...]              # [1, dout_eff] f32
        acc = jnp.dot(h, w, preferred_element_type=jnp.float32)   # f32 accumulate
        acc = jnp.maximum(acc + b, 0.0)                 # bias + ReLU in f32
        # Re-quantize between layers so every MXU pass sees bf16 inputs
        # (intentional bf16-in / f32-accumulate numerics).
        h = acc.astype(compute_dtype) if layer + 1 < num_layers else acc
    out_ref[...] = h.astype(out_ref.dtype)


def mlp_obs_encoder_forward(obs, weights, biases, *, block_rows=8192,
                            compute_dtype=jnp.bfloat16, out_dtype=jnp.float32):
    """MLPObsEncoder forward (Linear+ReLU stack) as one Pallas TPU kernel.

    obs:     [B, obs_dim] float array (f32 or bf16; never copied/padded in HBM)
    weights: list of [in_dim, out_dim] arrays (PyTorch weight.T)
    biases:  list of [out_dim] arrays
    returns: [B, out_dim_last] in out_dtype
    """
    assert len(weights) == len(biases) and len(weights) >= 1
    num_layers = len(weights)
    B, obs_dim = obs.shape
    assert weights[0].shape[0] == obs_dim
    out_last = weights[-1].shape[1]

    # Effective in-kernel feature widths: HBM-facing dims (obs_dim, out_last)
    # stay exact; internal hidden dims are padded to 128 lanes so hidden
    # activations are lane-dense.  Pad rows/cols of W and pad lanes of b are
    # zero, so padded lanes stay exactly zero through every ReLU.
    dims = [obs_dim] + [w.shape[1] for w in weights]
    dims_eff = [obs_dim] + [_round_up(d, _LANE) for d in dims[1:-1]] + [out_last]

    params = []
    for li, (w, b) in enumerate(zip(weights, biases)):
        din, dout = dims_eff[li], dims_eff[li + 1]
        wp = jnp.zeros((din, dout), compute_dtype)
        wp = wp.at[: w.shape[0], : w.shape[1]].set(w.astype(compute_dtype))
        bp = jnp.zeros((1, dout), jnp.float32)
        bp = bp.at[0, : b.shape[0]].set(b.astype(jnp.float32))
        params += [wp, bp]

    # ---- VMEM-budget-driven batch tile -----------------------------------
    in_bytes = jnp.dtype(obs.dtype).itemsize
    out_bytes = jnp.dtype(out_dtype).itemsize
    max_eff = max(dims_eff)
    param_bytes = sum(int(p.size) * p.dtype.itemsize for p in params)

    budget = _vmem_budget_bytes()
    headroom = 4 << 20                                   # compiler scratch etc.
    avail = budget - 2 * param_bytes - headroom
    bytes_per_row = (2 * obs_dim * in_bytes              # double-buffered input tile
                     + 2 * out_last * out_bytes          # double-buffered output tile
                     + 3 * max_eff * 4)                  # in-kernel activations (f32+bf16)
    tb = max(_SUBLANE, min(int(block_rows), avail // bytes_per_row))
    # Keep >=2-4 grid steps on large batches so v7x's two TensorCores both get
    # work; harmless on single-TC v5e/v6e (>=512-row tiles are near roofline).
    tb = min(tb, max(512, _round_up(pl.cdiv(B, 4), _SUBLANE)))
    tb = _round_up(tb, _SUBLANE)
    if tb >= B:
        tb = B            # one exact-size block covering the (possibly ragged) batch
    grid = (pl.cdiv(B, tb),)

    out_shape = jax.ShapeDtypeStruct((B, out_last), out_dtype)
    obs_spec = pl.BlockSpec((tb, obs_dim), lambda i: (i, 0))
    out_spec = pl.BlockSpec((tb, out_last), lambda i: (i, 0))
    kernel = functools.partial(_mlp_kernel, num_layers, compute_dtype)
    cparams = pltpu.CompilerParams(
        dimension_semantics=("parallel",),
        vmem_limit_bytes=int(budget),
    )

    def build(param_specs):
        return pl.pallas_call(
            kernel,
            out_shape=out_shape,
            grid=grid,
            in_specs=[obs_spec] + param_specs,
            out_specs=out_spec,
            compiler_params=cparams,
        )

    try:
        # Constant-index params only need a single VMEM buffer.
        param_specs = [
            pl.BlockSpec(p.shape, lambda i: (0, 0), pipeline_mode=pl.Buffered(1))
            for p in params
        ]
        return build(param_specs)(obs, *params)
    except Exception:
        # Fallback if this jax version rejects buffer_count=1: default
        # double-buffering only costs ~param_bytes extra VMEM here.
        param_specs = [pl.BlockSpec(p.shape, lambda i: (0, 0)) for p in params]
        return build(param_specs)(obs, *params)


def init_params(key, mlp_dims):
    """Synthetic nn.Linear-style init; weights stored transposed as [in, out]."""
    weights, biases = [], []
    for din, dout in zip(mlp_dims[:-1], mlp_dims[1:]):
        kw, kb, key = jax.random.split(key, 3)
        bound = 1.0 / jnp.sqrt(jnp.float32(din))
        weights.append(jax.random.uniform(kw, (din, dout), jnp.float32, -bound, bound))
        biases.append(jax.random.uniform(kb, (dout,), jnp.float32, -bound, bound))
    return weights, biases


def reference_forward(obs, weights, biases, compute_dtype=jnp.bfloat16):
    """Pure-JAX reference with the kernel's intentional numerics:
    bf16 matmul inputs, f32 accumulation, f32 bias+ReLU after every layer."""
    h = obs.astype(compute_dtype).astype(jnp.float32)
    n = len(weights)
    for i, (w, b) in enumerate(zip(weights, biases)):
        wq = w.astype(compute_dtype).astype(jnp.float32)
        a = jnp.dot(h, wq, precision=jax.lax.Precision.HIGHEST) + b
        a = jnp.maximum(a, 0.0)
        h = a.astype(compute_dtype).astype(jnp.float32) if i + 1 < n else a
    return h


if __name__ == "__main__":
    # Module-consistent small shapes:
    #   obs_dim = 16 (e.g. hfield obs), EXT_HIDDEN_DIMS = [32, 32], out_dim=None
    obs_dim = 16
    ext_hidden_dims = [32, 32]          # cfg.MODEL.TRANSFORMER.EXT_HIDDEN_DIMS
    mlp_dims = [obs_dim] + ext_hidden_dims

    key = jax.random.PRNGKey(0)
    k_obs, k_params = jax.random.split(key)
    weights, biases = init_params(k_params, mlp_dims)

    # --- tiny batch: single exact-size block, no padding anywhere ---
    batch = 8
    obs = jax.random.normal(k_obs, (batch, obs_dim), jnp.float32)
    out = jax.block_until_ready(mlp_obs_encoder_forward(obs, weights, biases))
    ref = reference_forward(obs, weights, biases)
    assert out.shape == (batch, mlp_dims[-1])
    assert out.dtype == jnp.float32
    assert jnp.allclose(out, ref, atol=1e-4, rtol=1e-4), \
        float(jnp.max(jnp.abs(out - ref)))

    # --- multi-step grid with a ragged final tile (60 = 3*16 + 12) ---
    batch2 = 60
    obs2 = jax.random.normal(jax.random.PRNGKey(1), (batch2, obs_dim), jnp.float32)
    out2 = jax.block_until_ready(
        mlp_obs_encoder_forward(obs2, weights, biases, block_rows=16))
    ref2 = reference_forward(obs2, weights, biases)
    assert out2.shape == (batch2, mlp_dims[-1])
    assert jnp.allclose(out2, ref2, atol=1e-4, rtol=1e-4), \
        float(jnp.max(jnp.abs(out2 - ref2)))

    print("KERNEL_OK")
</pallas_src>

<mosaic_0001>
module attributes {stable_mosaic.version = 11 : i64} {
  func.func @_mlp_kernel(%arg0: i32, %arg1: memref<8x16xf32, #tpu.memory_space<vmem>>, %arg2: memref<16x128xbf16, #tpu.memory_space<vmem>>, %arg3: memref<1x128xf32, #tpu.memory_space<vmem>>, %arg4: memref<128x32xbf16, #tpu.memory_space<vmem>>, %arg5: memref<1x32xf32, #tpu.memory_space<vmem>>, %arg6: memref<8x32xf32, #tpu.memory_space<vmem>>) attributes {dimension_semantics = [#tpu.dimension_semantics<parallel>], iteration_bounds = array<i64: 1>, scalar_prefetch = 0 : i64, scratch_operands = 0 : i64, tpu.core_type = #tpu.core_type<tc>, window_params = [{transform_indices = @transform_0, window_bounds = array<i64: 8, 16>}, {pipeline_mode = #tpu.pipeline_mode<synchronous>, transform_indices = @transform_1, window_bounds = array<i64: 16, 128>}, {pipeline_mode = #tpu.pipeline_mode<synchronous>, transform_indices = @transform_2, window_bounds = array<i64: 1, 128>}, {pipeline_mode = #tpu.pipeline_mode<synchronous>, transform_indices = @transform_3, window_bounds = array<i64: 128, 32>}, {pipeline_mode = #tpu.pipeline_mode<synchronous>, transform_indices = @transform_4, window_bounds = array<i64: 1, 32>}, {transform_indices = @transform_5, window_bounds = array<i64: 8, 32>}]} {
    %c0 = arith.constant 0 : index
    %c0_0 = arith.constant 0 : index
    %0 = vector.load %arg1[%c0, %c0_0] : memref<8x16xf32, #tpu.memory_space<vmem>>, vector<8x16xf32>
    %1 = arith.truncf %0 : vector<8x16xf32> to vector<8x16xbf16>
    %c0_1 = arith.constant 0 : index
    %c0_2 = arith.constant 0 : index
    %2 = vector.load %arg2[%c0_1, %c0_2] : memref<16x128xbf16, #tpu.memory_space<vmem>>, vector<16x128xbf16>
    %c0_3 = arith.constant 0 : index
    %c0_4 = arith.constant 0 : index
    %3 = vector.load %arg3[%c0_3, %c0_4] : memref<1x128xf32, #tpu.memory_space<vmem>>, vector<1x128xf32>
    %cst = arith.constant dense<0.000000e+00> : vector<8x128xf32>
    %4 = tpu.matmul %1, %2, %cst {dimension_numbers = #tpu.dot_dimension_numbers<[1], [0], [0], [1], [0, 0, 1, 1], [], []>} : vector<8x16xbf16>, vector<16x128xbf16>, vector<8x128xf32> -> vector<8x128xf32>
    %5 = vector.broadcast %3 : vector<1x128xf32> to vector<8x128xf32>
    %6 = arith.addf %4, %5 : vector<8x128xf32>
    %cst_5 = arith.constant 0.000000e+00 : f32
    %7 = vector.broadcast %cst_5 : f32 to vector<8x128xf32>
    %8 = arith.maximumf %6, %7 : vector<8x128xf32>
    %9 = arith.truncf %8 : vector<8x128xf32> to vector<8x128xbf16>
    %c0_6 = arith.constant 0 : index
    %c0_7 = arith.constant 0 : index
    %10 = vector.load %arg4[%c0_6, %c0_7] : memref<128x32xbf16, #tpu.memory_space<vmem>>, vector<128x32xbf16>
    %c0_8 = arith.constant 0 : index
    %c0_9 = arith.constant 0 : index
    %11 = vector.load %arg5[%c0_8, %c0_9] : memref<1x32xf32, #tpu.memory_space<vmem>>, vector<1x32xf32>
    %cst_10 = arith.constant dense<0.000000e+00> : vector<8x32xf32>
    %12 = tpu.matmul %9, %10, %cst_10 {dimension_numbers = #tpu.dot_dimension_numbers<[1], [0], [0], [1], [0, 0, 1, 1], [], []>} : vector<8x128xbf16>, vector<128x32xbf16>, vector<8x32xf32> -> vector<8x32xf32>
    %13 = vector.broadcast %11 : vector<1x32xf32> to vector<8x32xf32>
    %14 = arith.addf %12, %13 : vector<8x32xf32>
    %cst_11 = arith.constant 0.000000e+00 : f32
    %15 = vector.broadcast %cst_11 : f32 to vector<8x32xf32>
    %16 = arith.maximumf %14, %15 : vector<8x32xf32>
    %c0_12 = arith.constant 0 : index
    %c0_13 = arith.constant 0 : index
    %17 = vector.load %arg6[%c0_12, %c0_13] : memref<8x32xf32, #tpu.memory_space<vmem>>, vector<8x32xf32>
    tpu.vector_store %arg6[%c0_12, %c0_13], %16 {strides = array<i32>} : memref<8x32xf32, #tpu.memory_space<vmem>>, vector<8x32xf32>,
    return
  }
  func.func @transform_0(%arg0: i32) -> (i32, i32) {
    %c0_i32 = arith.constant 0 : i32
    %c0_i32_0 = arith.constant 0 : i32
    return %arg0, %c0_i32 : i32, i32
  }
  func.func @transform_1(%arg0: i32) -> (i32, i32) {
    %c0_i32 = arith.constant 0 : i32
    %c0_i32_0 = arith.constant 0 : i32
    %c0_i32_1 = arith.constant 0 : i32
    return %c0_i32, %c0_i32_0 : i32, i32
  }
  func.func @transform_2(%arg0: i32) -> (i32, i32) {
    %c0_i32 = arith.constant 0 : i32
    %c0_i32_0 = arith.constant 0 : i32
    %c0_i32_1 = arith.constant 0 : i32
    return %c0_i32, %c0_i32_0 : i32, i32
  }
  func.func @transform_3(%arg0: i32) -> (i32, i32) {
    %c0_i32 = arith.constant 0 : i32
    %c0_i32_0 = arith.constant 0 : i32
    %c0_i32_1 = arith.constant 0 : i32
    return %c0_i32, %c0_i32_0 : i32, i32
  }
  func.func @transform_4(%arg0: i32) -> (i32, i32) {
    %c0_i32 = arith.constant 0 : i32
    %c0_i32_0 = arith.constant 0 : i32
    %c0_i32_1 = arith.constant 0 : i32
    return %c0_i32, %c0_i32_0 : i32, i32
  }
  func.func @transform_5(%arg0: i32) -> (i32, i32) {
    %c0_i32 = arith.constant 0 : i32
    %c0_i32_0 = arith.constant 0 : i32
    return %arg0, %c0_i32 : i32, i32
  }
}

module attributes {stable_mosaic.version = 11 : i64} {
  func.func @_mlp_kernel(%arg0: i32, %arg1: memref<8x16xf32, #tpu.memory_space<vmem>>, %arg2: memref<16x128xbf16, #tpu.memory_space<vmem>>, %arg3: memref<1x128xf32, #tpu.memory_space<vmem>>, %arg4: memref<128x32xbf16, #tpu.memory_space<vmem>>, %arg5: memref<1x32xf32, #tpu.memory_space<vmem>>, %arg6: memref<8x32xf32, #tpu.memory_space<vmem>>) attributes {dimension_semantics = [#tpu.dimension_semantics<parallel>], iteration_bounds = array<i64: 1>, scalar_prefetch = 0 : i64, scratch_operands = 0 : i64, tpu.core_type = #tpu.core_type<tc>, window_params = [{transform_indices = @transform_0, window_bounds = array<i64: 8, 16>}, {pipeline_mode = #tpu.pipeline_mode<synchronous>, transform_indices = @transform_1, window_bounds = array<i64: 16, 128>}, {pipeline_mode = #tpu.pipeline_mode<synchronous>, transform_indices = @transform_2, window_bounds = array<i64: 1, 128>}, {pipeline_mode = #tpu.pipeline_mode<synchronous>, transform_indices = @transform_3, window_bounds = array<i64: 128, 32>}, {pipeline_mode = #tpu.pipeline_mode<synchronous>, transform_indices = @transform_4, window_bounds = array<i64: 1, 32>}, {transform_indices = @transform_5, window_bounds = array<i64: 8, 32>}]} {
    %c0 = arith.constant 0 : index
    %c0_0 = arith.constant 0 : index
    %0 = vector.load %arg1[%c0, %c0_0] : memref<8x16xf32, #tpu.memory_space<vmem>>, vector<8x16xf32>
    %1 = arith.truncf %0 : vector<8x16xf32> to vector<8x16xbf16>
    %c0_1 = arith.constant 0 : index
    %c0_2 = arith.constant 0 : index
    %2 = vector.load %arg2[%c0_1, %c0_2] : memref<16x128xbf16, #tpu.memory_space<vmem>>, vector<16x128xbf16>
    %c0_3 = arith.constant 0 : index
    %c0_4 = arith.constant 0 : index
    %3 = vector.load %arg3[%c0_3, %c0_4] : memref<1x128xf32, #tpu.memory_space<vmem>>, vector<1x128xf32>
    %cst = arith.constant dense<0.000000e+00> : vector<8x128xf32>
    %4 = tpu.matmul %1, %2, %cst {dimension_numbers = #tpu.dot_dimension_numbers<[1], [0], [0], [1], [0, 0, 1, 1], [], []>} : vector<8x16xbf16>, vector<16x128xbf16>, vector<8x128xf32> -> vector<8x128xf32>
    %5 = vector.broadcast %3 : vector<1x128xf32> to vector<8x128xf32>
    %6 = arith.addf %4, %5 : vector<8x128xf32>
    %cst_5 = arith.constant 0.000000e+00 : f32
    %7 = vector.broadcast %cst_5 : f32 to vector<8x128xf32>
    %8 = arith.maximumf %6, %7 : vector<8x128xf32>
    %9 = arith.truncf %8 : vector<8x128xf32> to vector<8x128xbf16>
    %c0_6 = arith.constant 0 : index
    %c0_7 = arith.constant 0 : index
    %10 = vector.load %arg4[%c0_6, %c0_7] : memref<128x32xbf16, #tpu.memory_space<vmem>>, vector<128x32xbf16>
    %c0_8 = arith.constant 0 : index
    %c0_9 = arith.constant 0 : index
    %11 = vector.load %arg5[%c0_8, %c0_9] : memref<1x32xf32, #tpu.memory_space<vmem>>, vector<1x32xf32>
    %cst_10 = arith.constant dense<0.000000e+00> : vector<8x32xf32>
    %12 = tpu.matmul %9, %10, %cst_10 {dimension_numbers = #tpu.dot_dimension_numbers<[1], [0], [0], [1], [0, 0, 1, 1], [], []>} : vector<8x128xbf16>, vector<128x32xbf16>, vector<8x32xf32> -> vector<8x32xf32>
    %13 = vector.broadcast %11 : vector<1x32xf32> to vector<8x32xf32>
    %14 = arith.addf %12, %13 : vector<8x32xf32>
    %cst_11 = arith.constant 0.000000e+00 : f32
    %15 = vector.broadcast %cst_11 : f32 to vector<8x32xf32>
    %16 = arith.maximumf %14, %15 : vector<8x32xf32>
    %c0_12 = arith.constant 0 : index
    %c0_13 = arith.constant 0 : index
    %17 = vector.load %arg6[%c0_12, %c0_13] : memref<8x32xf32, #tpu.memory_space<vmem>>, vector<8x32xf32>
    tpu.vector_store %arg6[%c0_12, %c0_13], %16 {strides = array<i32>} : memref<8x32xf32, #tpu.memory_space<vmem>>, vector<8x32xf32>,
    return
  }
  func.func @transform_0(%arg0: i32) -> (i32, i32) {
    %c0_i32 = arith.constant 0 : i32
    %c0_i32_0 = arith.constant 0 : i32
    return %arg0, %c0_i32 : i32, i32
  }
  func.func @transform_1(%arg0: i32) -> (i32, i32) {
    %c0_i32 = arith.constant 0 : i32
    %c0_i32_0 = arith.constant 0 : i32
    %c0_i32_1 = arith.constant 0 : i32
    return %c0_i32, %c0_i32_0 : i32, i32
  }
  func.func @transform_2(%arg0: i32) -> (i32, i32) {
    %c0_i32 = arith.constant 0 : i32
    %c0_i32_0 = arith.constant 0 : i32
    %c0_i32_1 = arith.constant 0 : i32
    return %c0_i32, %c0_i32_0 : i32, i32
  }
  func.func @transform_3(%arg0: i32) -> (i32, i32) {
    %c0_i32 = arith.constant 0 : i32
    %c0_i32_0 = arith.constant 0 : i32
    %c0_i32_1 = arith.constant 0 : i32
    return %c0_i32, %c0_i32_0 : i32, i32
  }
  func.func @transform_4(%arg0: i32) -> (i32, i32) {
    %c0_i32 = arith.constant 0 : i32
    %c0_i32_0 = arith.constant 0 : i32
    %c0_i32_1 = arith.constant 0 : i32
    return %c0_i32, %c0_i32_0 : i32, i32
  }
  func.func @transform_5(%arg0: i32) -> (i32, i32) {
    %c0_i32 = arith.constant 0 : i32
    %c0_i32_0 = arith.constant 0 : i32
    return %arg0, %c0_i32 : i32, i32
  }
}

</mosaic_0001>

<bundles_post_ra>
// kernel: tpu_custom_call.1
= control target key start
LH: loop header
LB: loop body
LE: loop exit
PB: predicated region body
PF: predicated region fallthrough
CT: control target
= control target key end

     0   :  { %v298_v1 = vmov 0.0   ;;  %vm39_vm0 = vcmask 130048   ;;  %vm299_vm1 = vmmov 0   ;;  %s379_s0 = inlined_call_operand.vmem [shape: f32[8,16], index: 0, kind: input, shape index: {}]   ;;  %s380_s1 = inlined_call_operand.vmem [shape: bf16[16,128], index: 1, kind: input, shape index: {}]   ;;  %s381_s2 = inlined_call_operand.vmem [shape: f32[1,128], index: 2, kind: input, shape index: {}]   ;;  %s382_s3 = inlined_call_operand.vmem [shape: bf16[128,32], index: 3, kind: input, shape index: {}]   ;;  %s383_s4 = inlined_call_operand.vmem [shape: f32[1,32], index: 4, kind: input, shape index: {}]   ;;  %s384_s5 = inlined_call_operand.hbm [shape: f32[8,32], index: 5, kind: output, shape index: {}]  }
   0x1   :  { %v265_v0 = vld [vmem:[%s380_s1] sm:$0xff]   ;;  %236 = vmatprep.subr.bf16.mxu0 %v298_v1  ;;  %242 = vmatprep.subr.bf16.mxu1 %v298_v1  ;;  %v267_v5 = vld [vmem:[%s382_s3 + $0x8] sm:$0xff]   ;;  %v268_v6 = vld [vmem:[%s382_s3 + $0x10] sm:$0xff]  }
   0x2   :  { %v22_v2 = vld [vmem:[%s379_s0] sm:$0xff]  ;;  %237 = vmatpush3.bf16.msra.mxu0 %v265_v0  ;;  %238 = vmatprep.mubr.msk.bf16.mxu0 %vm299_vm1, %v298_v1 }
   0x3   :  { %v266_v3 = vld [vmem:[%s382_s3] sm:$0xff]   ;;  %v23_v4 = vpack.c.bf16 %v22_v2, %v22_v2  ;;  %258 = vmatprep.mubr.msk.bf16.mxu1 %vm299_vm1, %v298_v1 }
   0x4   :  { %243 = vmatpush3.bf16.msra.mxu1 %v266_v3 }
   0x5   :  { %244 = vmatprep.subr.bf16.mxu1 %v298_v1  ;;  %239 = vmatmul.mubr.msk.bf16.vlgmr.msra.gmra.mrb[0].mxu0 %vm39_vm0, %v23_v4 }
   0x8   :  { %245 = vmatpush3.bf16.msra.mxu1 %v267_v5 }
   0x9   :  { %246 = vmatprep.subr.bf16.mxu1 %v298_v1 }
   0xa   :  { %10 = vsyncpa [#allocation3], 0  ;;  %v269_v7 = vld [vmem:[%s382_s3 + $0x18] sm:$0xff]   ;;  %v270_v8 = vld [vmem:[%s382_s3 + $0x20] sm:$0xff]   ;;  %s300_s15 = smov [#allocation2]   ;;  %vm197_vm2 = vcmask 261120  }
   0xb   :  { %v271_v9 = vld [vmem:[%s382_s3 + $0x28] sm:$0xff]   ;;  %v272_v10 = vld [vmem:[%s382_s3 + $0x30] sm:$0xff]   ;;  %v273_v11 = vld [vmem:[%s382_s3 + $0x38] sm:$0xff]   ;;  %s205_s3 = sshll.u32 %s300_s15, 4  ;;  %s206_s3 = int_to_ptr.vmem [resolvable:$true] %s205_s3 }
   0xc   :  { %247 = vmatpush3.bf16.msra.mxu1 %v268_v6  ;;  %v213_v12 = vld [vmem:[%s381_s2] ss:$0 sm:$0xff]  ;;  %s274_s2 = scalar_lea.vmem %s206_s3, 128  ;;  %p279_p1 = scmp.lt.s32.totalorder %s206_s3, %s206_s3 }
   0xd   :  { %248 = vmatprep.subr.bf16.mxu1 %v298_v1  ;;  %v216_v20 = vld [vmem:[%s383_s4] ss:$0 sm:$0xff]  ;;  %p275_p0 = scmp.ne.s32.totalorder %s206_s3, %s274_s2  ;;  %p280_p2 = scmp.lt.s32.totalorder %s274_s2, %s274_s2 }
   0xf   :  { %p281_p3 = por %p280_p2, %p279_p1 }
  0x10   :  { %249 = vmatpush3.bf16.msra.mxu1 %v269_v7 }
  0x11   :  { %250 = vmatprep.subr.bf16.mxu1 %v298_v1  ;;  %p282_p4 = pnand %p281_p3, %p275_p0 }
  0x14   :  { %251 = vmatpush3.bf16.msra.mxu1 %v270_v8 }
  0x15   :  { %252 = vmatprep.subr.bf16.mxu1 %v298_v1 }
  0x18   :  { %253 = vmatpush3.bf16.msra.mxu1 %v271_v9 }
  0x19   :  { %254 = vmatprep.subr.bf16.mxu1 %v298_v1 }
  0x1c   :  { %255 = vmatpush3.bf16.msra.mxu1 %v272_v10 }
  0x1d   :  { %256 = vmatprep.subr.bf16.mxu1 %v298_v1 }
  0x20   :  { %257 = vmatpush3.bf16.msra.mxu1 %v273_v11 }
  0xd8   :  { %v77_v13 = vpop.f32.mrb[0].mxu0 }
  0xd9   :  { %v78_v14 = vadd.f32 %v213_v12, %v77_v13  ;;  %v240_v15 = vpop.f32.mrb[1].mxu0 }
  0xda   :  { %v80_v16 = vpop.f32.mrb[2].mxu0 }
  0xdb   :  { %v83_v17 = vmax.f32 %v78_v14, 0.0  ;;  %v241_v18 = vpop.f32.mrb[3].mxu0 }
  0xdd   :  { %v84_v19 = vpack.c.bf16 %v83_v17, %v83_v17 }
  0xdf   :  { %259 = vmatmul.mubr.bf16.vlgmr.msra.gmra.mrb[0].mxu1 %v84_v19 }
 0x1b2   :  { %v190_v21 = vpop.f32.mrb[0].mxu1 }
 0x1b3   :  { %v191_v22 = vadd.f32 %v216_v20, %v190_v21  ;;  %v260_v23 = vpop.f32.mrb[1].mxu1 }
 0x1b4   :  { %v193_v24 = vpop.f32.mrb[2].mxu1 }
 0x1b5   :  { %v196_v25 = vmax.f32 %v191_v22, 0.0  ;;  %v261_v26 = vpop.f32.mrb[3].mxu1 }
 0x1b7   :  { %198 = vst.msk [vmem:[#allocation2] sm:$0xff] %vm197_vm2, %v196_v25 }
 0x1b8   :  { %285 = shalt.err (!%p282_p4)
}
 0x1b9   :  { %s286_s17 = scalar_lea.hbm %s384_s5, 128 }
 0x1ba   :  { %p287_p5 = scmp.ne.s32.totalorder %s384_s5, %s286_s17  ;;  %p290_p6 = scmp.lt.u32.totalorder %s286_s17, %s384_s5 }
 0x1bc   :  { %p292_p7 = pnand %p290_p6, %p287_p5 }
 0x1be   :  { %295 = shalt.err (!%p292_p7)
}
 0x1bf   :  { %208 = dma.vmem_to_hbm [thread:$0]  %s206_s3, 128, %s384_s5, [#allocation3]  }
 0x1c0   :  { %296 = dma.done.wait [#allocation3], 128  }
 0x1c1   :  { %297 = vsyncadd [#allocation3], 4294967168 }
 0x1c2   :  { %212 = vsyncpa [#allocation3], 1 }

// kernel: tpu_custom_call.1
= control target key start
LH: loop header
LB: loop body
LE: loop exit
PB: predicated region body
PF: predicated region fallthrough
CT: control target
= control target key end

     0   :  { %v298_v1 = vmov 0.0   ;;  %vm39_vm0 = vcmask 130048   ;;  %vm299_vm1 = vmmov 0   ;;  %s379_s0 = inlined_call_operand.vmem [shape: f32[8,16], index: 0, kind: input, shape index: {}]   ;;  %s380_s1 = inlined_call_operand.vmem [shape: bf16[16,128], index: 1, kind: input, shape index: {}]   ;;  %s381_s2 = inlined_call_operand.vmem [shape: f32[1,128], index: 2, kind: input, shape index: {}]   ;;  %s382_s3 = inlined_call_operand.vmem [shape: bf16[128,32], index: 3, kind: input, shape index: {}]   ;;  %s383_s4 = inlined_call_operand.vmem [shape: f32[1,32], index: 4, kind: input, shape index: {}]   ;;  %s384_s5 = inlined_call_operand.hbm [shape: f32[8,32], index: 5, kind: output, shape index: {}]  }
   0x1   :  { %v265_v0 = vld [vmem:[%s380_s1] sm:$0xff]   ;;  %236 = vmatprep.subr.bf16.mxu0 %v298_v1  ;;  %242 = vmatprep.subr.bf16.mxu1 %v298_v1  ;;  %v267_v5 = vld [vmem:[%s382_s3 + $0x8] sm:$0xff]   ;;  %v268_v6 = vld [vmem:[%s382_s3 + $0x10] sm:$0xff]  }
   0x2   :  { %v22_v2 = vld [vmem:[%s379_s0] sm:$0xff]  ;;  %237 = vmatpush3.bf16.msra.mxu0 %v265_v0  ;;  %238 = vmatprep.mubr.msk.bf16.mxu0 %vm299_vm1, %v298_v1 }
   0x3   :  { %v266_v3 = vld [vmem:[%s382_s3] sm:$0xff]   ;;  %v23_v4 = vpack.c.bf16 %v22_v2, %v22_v2  ;;  %258 = vmatprep.mubr.msk.bf16.mxu1 %vm299_vm1, %v298_v1 }
   0x4   :  { %243 = vmatpush3.bf16.msra.mxu1 %v266_v3 }
   0x5   :  { %244 = vmatprep.subr.bf16.mxu1 %v298_v1  ;;  %239 = vmatmul.mubr.msk.bf16.vlgmr.msra.gmra.mrb[0].mxu0 %vm39_vm0, %v23_v4 }
   0x8   :  { %245 = vmatpush3.bf16.msra.mxu1 %v267_v5 }
   0x9   :  { %246 = vmatprep.subr.bf16.mxu1 %v298_v1 }
   0xa   :  { %10 = vsyncpa [#allocation3], 0  ;;  %v269_v7 = vld [vmem:[%s382_s3 + $0x18] sm:$0xff]   ;;  %v270_v8 = vld [vmem:[%s382_s3 + $0x20] sm:$0xff]   ;;  %s300_s15 = smov [#allocation2]   ;;  %vm197_vm2 = vcmask 261120  }
   0xb   :  { %v271_v9 = vld [vmem:[%s382_s3 + $0x28] sm:$0xff]   ;;  %v272_v10 = vld [vmem:[%s382_s3 + $0x30] sm:$0xff]   ;;  %v273_v11 = vld [vmem:[%s382_s3 + $0x38] sm:$0xff]   ;;  %s205_s3 = sshll.u32 %s300_s15, 4  ;;  %s206_s3 = int_to_ptr.vmem [resolvable:$true] %s205_s3 }
   0xc   :  { %247 = vmatpush3.bf16.msra.mxu1 %v268_v6  ;;  %v213_v12 = vld [vmem:[%s381_s2] ss:$0 sm:$0xff]  ;;  %s274_s2 = scalar_lea.vmem %s206_s3, 128  ;;  %p279_p1 = scmp.lt.s32.totalorder %s206_s3, %s206_s3 }
   0xd   :  { %248 = vmatprep.subr.bf16.mxu1 %v298_v1  ;;  %v216_v20 = vld [vmem:[%s383_s4] ss:$0 sm:$0xff]  ;;  %p275_p0 = scmp.ne.s32.totalorder %s206_s3, %s274_s2  ;;  %p280_p2 = scmp.lt.s32.totalorder %s274_s2, %s274_s2 }
   0xf   :  { %p281_p3 = por %p280_p2, %p279_p1 }
  0x10   :  { %249 = vmatpush3.bf16.msra.mxu1 %v269_v7 }
  0x11   :  { %250 = vmatprep.subr.bf16.mxu1 %v298_v1  ;;  %p282_p4 = pnand %p281_p3, %p275_p0 }
  0x14   :  { %251 = vmatpush3.bf16.msra.mxu1 %v270_v8 }
  0x15   :  { %252 = vmatprep.subr.bf16.mxu1 %v298_v1 }
  0x18   :  { %253 = vmatpush3.bf16.msra.mxu1 %v271_v9 }
  0x19   :  { %254 = vmatprep.subr.bf16.mxu1 %v298_v1 }
  0x1c   :  { %255 = vmatpush3.bf16.msra.mxu1 %v272_v10 }
  0x1d   :  { %256 = vmatprep.subr.bf16.mxu1 %v298_v1 }
  0x20   :  { %257 = vmatpush3.bf16.msra.mxu1 %v273_v11 }
  0xd8   :  { %v77_v13 = vpop.f32.mrb[0].mxu0 }
  0xd9   :  { %v78_v14 = vadd.f32 %v213_v12, %v77_v13  ;;  %v240_v15 = vpop.f32.mrb[1].mxu0 }
  0xda   :  { %v80_v16 = vpop.f32.mrb[2].mxu0 }
  0xdb   :  { %v83_v17 = vmax.f32 %v78_v14, 0.0  ;;  %v241_v18 = vpop.f32.mrb[3].mxu0 }
  0xdd   :  { %v84_v19 = vpack.c.bf16 %v83_v17, %v83_v17 }
  0xdf   :  { %259 = vmatmul.mubr.bf16.vlgmr.msra.gmra.mrb[0].mxu1 %v84_v19 }
 0x1b2   :  { %v190_v21 = vpop.f32.mrb[0].mxu1 }
 0x1b3   :  { %v191_v22 = vadd.f32 %v216_v20, %v190_v21  ;;  %v260_v23 = vpop.f32.mrb[1].mxu1 }
 0x1b4   :  { %v193_v24 = vpop.f32.mrb[2].mxu1 }
 0x1b5   :  { %v196_v25 = vmax.f32 %v191_v22, 0.0  ;;  %v261_v26 = vpop.f32.mrb[3].mxu1 }
 0x1b7   :  { %198 = vst.msk [vmem:[#allocation2] sm:$0xff] %vm197_vm2, %v196_v25 }
 0x1b8   :  { %285 = shalt.err (!%p282_p4)
}
 0x1b9   :  { %s286_s17 = scalar_lea.hbm %s384_s5, 128 }
 0x1ba   :  { %p287_p5 = scmp.ne.s32.totalorder %s384_s5, %s286_s17  ;;  %p290_p6 = scmp.lt.u32.totalorder %s286_s17, %s384_s5 }
 0x1bc   :  { %p292_p7 = pnand %p290_p6, %p287_p5 }
 0x1be   :  { %295 = shalt.err (!%p292_p7)
}
 0x1bf   :  { %208 = dma.vmem_to_hbm [thread:$0]  %s206_s3, 128, %s384_s5, [#allocation3]  }
 0x1c0   :  { %296 = dma.done.wait [#allocation3], 128  }
 0x1c1   :  { %297 = vsyncadd [#allocation3], 4294967168 }
 0x1c2   :  { %212 = vsyncpa [#allocation3], 1 }

</bundles_post_ra>
